<compile_context>
chip_gen: v7x
topology: tpu7x:2x2x1
jax: 0.10.0
libtpu: 0.0.40
codegen_flags: <defaults>
</compile_context>

<pallas_src>
import functools

import jax
import jax.numpy as jnp
from jax import lax
from jax.experimental import pallas as pl
from jax.experimental.pallas import tpu as pltpu

PAD_TAG_ID = 9


def _sigmoid(x):
    # explicit form (exp + divide) to guarantee clean Mosaic lowering
    return 1.0 / (1.0 + jnp.exp(-x))


# ------------------- fused BiLSTM + linear (emissions) kernel ---------------
def bilstm_linear_kernel(x_ref, len_ref,
                         wih_f_ref, whh_f_ref, b_f_ref,
                         wih_b_ref, whh_b_ref, b_b_ref,
                         lw_f_ref, lw_b_ref, lb_ref,
                         em_ref,
                         xpf_sc, xpb_sc, outf_sc, outb_sc):
    TB, _ = x_ref.shape
    H = whh_f_ref.shape[0]
    B = len_ref.shape[0]
    T = TB // B

    # ---- hoisted input projections: one big MXU matmul per direction ----
    x = x_ref[...]                                            # [T*B, E]
    xpf_sc[...] = (jnp.dot(x, wih_f_ref[...], preferred_element_type=jnp.float32)
                   + b_f_ref[...])                            # [T*B, 4H]
    xpb_sc[...] = (jnp.dot(x, wih_b_ref[...], preferred_element_type=jnp.float32)
                   + b_b_ref[...])

    # loop-invariant loads
    lens = len_ref[...]                                       # [B, 1] int32
    whh_f = whh_f_ref[...]                                    # [H, 4H]
    whh_b = whh_b_ref[...]
    zeros = jnp.zeros((B, H), jnp.float32)

    def cell(xp_row, h, c, whh):
        # fused gates: single [B,H]x[H,4H] recurrent matmul, slice i|f|g|o
        gates = xp_row + jnp.dot(h, whh, preferred_element_type=jnp.float32)
        i_g = _sigmoid(gates[:, 0:H])
        f_g = _sigmoid(gates[:, H:2 * H])
        g_g = jnp.tanh(gates[:, 2 * H:3 * H])
        o_g = _sigmoid(gates[:, 3 * H:4 * H])
        c_new = f_g * c + i_g * g_g
        h_new = o_g * jnp.tanh(c_new)
        return h_new, c_new

    def fwd_body(t, carry):
        h, c = carry
        m = (t < lens).astype(jnp.float32)                    # [B,1], no VMEM load
        h_new, c_new = cell(xpf_sc[pl.ds(t * B, B)], h, c, whh_f)
        h = m * h_new + (1.0 - m) * h
        c = m * c_new + (1.0 - m) * c
        outf_sc[pl.ds(t * B, B)] = m * h                      # padded steps -> 0
        return h, c

    lax.fori_loop(0, T, fwd_body, (zeros, zeros))

    def bwd_body(i, carry):
        t = T - 1 - i
        h, c = carry
        m = (t < lens).astype(jnp.float32)
        h_new, c_new = cell(xpb_sc[pl.ds(t * B, B)], h, c, whh_b)
        h = m * h_new + (1.0 - m) * h                         # state stays 0 past len
        c = m * c_new + (1.0 - m) * c
        outb_sc[pl.ds(t * B, B)] = m * h
        return h, c

    lax.fori_loop(0, T, bwd_body, (zeros, zeros))

    # ---- fused linear epilogue: logits = [out_f | out_b] @ W + b, one slab ----
    em_ref[...] = (jnp.dot(outf_sc[...], lw_f_ref[...],
                           preferred_element_type=jnp.float32)
                   + jnp.dot(outb_sc[...], lw_b_ref[...],
                             preferred_element_type=jnp.float32)
                   + lb_ref[...])                             # [T*B, O]


# --------------------------- CRF log-likelihood -----------------------------
def crf_loss_kernel(em_ref, oh_ref, last_oh_ref, mask_ref, len_ref,
                    trans_ref, start_ref, end_ref, llh_ref):
    TB, O = em_ref.shape
    B = last_oh_ref.shape[0]
    T = TB // B

    trans = trans_ref[...]                                    # [O, O]
    start = start_ref[...]                                    # [1, O]
    end = end_ref[...]                                        # [1, O]
    lens = len_ref[...]                                       # [B, 1] int32

    # ---- numerator: gold-path score, vectorized over time ----
    oh_first = oh_ref[0:B, :]                                 # [B, O]
    em_first = em_ref[0:B, :]                                 # [B, O]
    oh_prev = oh_ref[0:(T - 1) * B, :]                        # [(T-1)*B, O]
    oh_cur = oh_ref[B:T * B, :]
    em_cur = em_ref[B:T * B, :]
    mask_cur = mask_ref[B:T * B, :]                           # [(T-1)*B, 1]

    emit_first = jnp.sum(oh_first * em_first, axis=1, keepdims=True)      # [B,1]
    start_sc = jnp.sum(oh_first * start, axis=1, keepdims=True)           # [B,1]
    end_sc = jnp.sum(last_oh_ref[...] * end, axis=1, keepdims=True)       # [B,1]
    tr_all = jnp.sum(
        jnp.dot(oh_prev, trans, preferred_element_type=jnp.float32) * oh_cur,
        axis=1, keepdims=True)                                            # [(T-1)*B,1]
    emit_cur = jnp.sum(oh_cur * em_cur, axis=1, keepdims=True)

    num = (jnp.sum(start_sc + emit_first, axis=0, keepdims=True)
           + jnp.sum(mask_cur * (tr_all + emit_cur), axis=0, keepdims=True)
           + jnp.sum(end_sc, axis=0, keepdims=True))                      # [1,1]

    # ---- denominator: forward algorithm (matmul-form logsumexp) ----
    exp_trans = jnp.exp(trans)                                # hoisted, [O,O]
    score0 = start + em_first                                 # [B, O]

    def den_body(t, score):
        m = (t < lens).astype(jnp.float32)                    # [B,1]
        em_t = em_ref[pl.ds(t * B, B)]                        # [B,O]
        mx = jnp.max(score, axis=1, keepdims=True)            # [B,1]
        p = jnp.exp(score - mx)
        nxt = mx + jnp.log(jnp.dot(p, exp_trans,
                                   preferred_element_type=jnp.float32)) + em_t
        return m * nxt + (1.0 - m) * score

    score = lax.fori_loop(1, T, den_body, score0)
    score = score + end
    mx = jnp.max(score, axis=1, keepdims=True)
    den = mx + jnp.log(jnp.sum(jnp.exp(score - mx), axis=1, keepdims=True))  # [B,1]
    den_total = jnp.sum(den, axis=0, keepdims=True)                          # [1,1]

    llh_ref[...] = (num - den_total) / float(B)


# ------------------------------ Viterbi decode ------------------------------
def viterbi_kernel(em_ref, trans_ref, start_ref, end_ref, out_ref, hist_ref,
                   *, batch):
    TB, O = em_ref.shape
    B = batch
    T = TB // B

    # loop-invariant constants hoisted out of the recursions
    trans_b = jnp.broadcast_to(trans_ref[...][None, :, :], (B, O, O))
    iota_boo = lax.broadcasted_iota(jnp.int32, (B, O, O), 1)
    iota_bo = lax.broadcasted_iota(jnp.int32, (B, O), 1)

    score0 = start_ref[...] + em_ref[0:B, :]                  # [B, O]

    def fwd(t, score):
        em_t = em_ref[pl.ds(t * B, B)]                        # [B, O]
        nxt = score[:, :, None] + trans_b + em_t[:, None, :]  # [B, O, O]
        mx = jnp.max(nxt, axis=1, keepdims=True)              # [B, 1, O]
        idx = jnp.min(jnp.where(nxt == mx, iota_boo, O), axis=1)   # first argmax
        hist_ref[pl.ds(t * B, B)] = idx
        return mx[:, 0, :]

    score = lax.fori_loop(1, T, fwd, score0)
    score = score + end_ref[...]
    mx = jnp.max(score, axis=1, keepdims=True)
    best = jnp.min(jnp.where(score == mx, iota_bo, O), axis=1, keepdims=True)
    out_ref[pl.ds((T - 1) * B, B)] = best                     # [B, 1] int32

    def back(i, cur):
        t = T - 2 - i
        hist_t = hist_ref[pl.ds((t + 1) * B, B)]              # [B, O]
        sel = iota_bo == cur                                  # one-hot of current tag
        prev = jnp.sum(jnp.where(sel, hist_t, 0), axis=1, keepdims=True)
        out_ref[pl.ds(t * B, B)] = prev
        return prev

    lax.fori_loop(0, T - 1, back, best)


# --------------------------------- wrapper ----------------------------------
def init_params(key, vocab_size, embedding_dim, hidden_size, output_size):
    E, H, O = embedding_dim, hidden_size, output_size
    ks = jax.random.split(key, 12)
    s = 0.1
    return {
        "embedding": s * jax.random.normal(ks[0], (vocab_size, E), jnp.float32),
        # gate-fused LSTM weights, columns ordered [i | f | g | o] (PyTorch order)
        "wih_f": s * jax.random.normal(ks[1], (E, 4 * H), jnp.float32),
        "whh_f": s * jax.random.normal(ks[2], (H, 4 * H), jnp.float32),
        "b_f":   s * jax.random.normal(ks[3], (1, 4 * H), jnp.float32),
        "wih_b": s * jax.random.normal(ks[4], (E, 4 * H), jnp.float32),
        "whh_b": s * jax.random.normal(ks[5], (H, 4 * H), jnp.float32),
        "b_b":   s * jax.random.normal(ks[6], (1, 4 * H), jnp.float32),
        "linear_w": s * jax.random.normal(ks[7], (2 * H, O), jnp.float32),
        "linear_b": s * jax.random.normal(ks[8], (1, O), jnp.float32),
        "transitions": s * jax.random.normal(ks[9], (O, O), jnp.float32),
        "start_trans": s * jax.random.normal(ks[10], (1, O), jnp.float32),
        "end_trans":   s * jax.random.normal(ks[11], (1, O), jnp.float32),
    }


def bilstm_crf_forward(params, sents, lengths, labels):
    B, T = sents.shape
    E = params["embedding"].shape[1]
    H = params["whh_f"].shape[0]
    O = params["linear_w"].shape[1]

    # --- embedding lookup (glue) + time-major flatten: row r = t*B + b ---
    emb = jnp.take(params["embedding"], sents, axis=0)        # [B, T, E]
    x_flat = jnp.transpose(emb, (1, 0, 2)).reshape(T * B, E)  # [T*B, E]
    lens = lengths.astype(jnp.int32)[:, None]                 # [B, 1]

    lw_f = params["linear_w"][:H]                             # [H, O]
    lw_b = params["linear_w"][H:]                             # [H, O]

    # fused BiLSTM + linear: emissions, time-major-flat [T*B, O]
    em_flat = pl.pallas_call(
        bilstm_linear_kernel,
        out_shape=jax.ShapeDtypeStruct((T * B, O), jnp.float32),
        scratch_shapes=[pltpu.VMEM((T * B, 4 * H), jnp.float32),
                        pltpu.VMEM((T * B, 4 * H), jnp.float32),
                        pltpu.VMEM((T * B, H), jnp.float32),
                        pltpu.VMEM((T * B, H), jnp.float32)],
    )(x_flat, lens,
      params["wih_f"], params["whh_f"], params["b_f"],
      params["wih_b"], params["whh_b"], params["b_b"],
      lw_f, lw_b, params["linear_b"])

    # --- CRF loss inputs (torchcrf semantics, reduction='mean') ---
    crf_mask = labels != PAD_TAG_ID                           # [B, T] bool
    tags = jnp.minimum(labels, PAD_TAG_ID - 1)                # clamp_max
    oh = jax.nn.one_hot(tags, O, dtype=jnp.float32)           # [B, T, O]
    oh_flat = jnp.transpose(oh, (1, 0, 2)).reshape(T * B, O)
    mask_flat = jnp.transpose(crf_mask, (1, 0)).astype(jnp.float32).reshape(T * B, 1)
    crf_len = jnp.sum(crf_mask.astype(jnp.int32), axis=1)     # [B]
    seq_ends = jnp.maximum(crf_len - 1, 0)                    # guard all-PAD rows
    last_tags = jnp.take_along_axis(tags, seq_ends[:, None], axis=1)[:, 0]
    last_oh = jax.nn.one_hot(last_tags, O, dtype=jnp.float32)

    llh_mean = pl.pallas_call(
        crf_loss_kernel,
        out_shape=jax.ShapeDtypeStruct((1, 1), jnp.float32),
    )(em_flat, oh_flat, last_oh, mask_flat, crf_len[:, None],
      params["transitions"], params["start_trans"], params["end_trans"])
    neg_loss = -llh_mean[0, 0]    # module returns (-loss, decoded); loss = llh.mean()

    # --- Viterbi decode on full-length logits (crf.decode(logits), no mask) ---
    out_flat = pl.pallas_call(
        functools.partial(viterbi_kernel, batch=B),
        out_shape=jax.ShapeDtypeStruct((T * B, 1), jnp.int32),
        scratch_shapes=[pltpu.VMEM((T * B, O), jnp.int32)],
    )(em_flat, params["transitions"], params["start_trans"], params["end_trans"])
    decoded = jnp.transpose(out_flat.reshape(T, B), (1, 0))   # [B, T]

    return neg_loss, decoded


if __name__ == "__main__":
    vocab_size, embedding_dim, hidden_size, output_size = 50, 16, 32, 10
    B, T = 2, 8

    key = jax.random.PRNGKey(0)
    kp, ks, kl = jax.random.split(key, 3)
    params = init_params(kp, vocab_size, embedding_dim, hidden_size, output_size)

    sents = jax.random.randint(ks, (B, T), 0, vocab_size, dtype=jnp.int32)
    lengths = jnp.array([8, 6], dtype=jnp.int32)              # sorted descending
    labels = jax.random.randint(kl, (B, T), 0, PAD_TAG_ID, dtype=jnp.int32)
    pad_pos = jnp.arange(T)[None, :] >= lengths[:, None]
    labels = jnp.where(pad_pos, PAD_TAG_ID, labels)           # pad tag on padded steps

    neg_loss, decoded = bilstm_crf_forward(params, sents, lengths, labels)
    neg_loss = jax.block_until_ready(neg_loss)
    decoded = jax.block_until_ready(decoded)

    assert decoded.shape == (B, T)
    assert bool(jnp.isfinite(neg_loss))
    print("KERNEL_OK")
</pallas_src>

<mosaic_0001>
module attributes {stable_mosaic.version = 11 : i64} {
  func.func @bilstm_linear_kernel(%arg0: memref<16x16xf32, #tpu.memory_space<vmem>>, %arg1: memref<2x1xi32, #tpu.memory_space<vmem>>, %arg2: memref<16x128xf32, #tpu.memory_space<vmem>>, %arg3: memref<32x128xf32, #tpu.memory_space<vmem>>, %arg4: memref<1x128xf32, #tpu.memory_space<vmem>>, %arg5: memref<16x128xf32, #tpu.memory_space<vmem>>, %arg6: memref<32x128xf32, #tpu.memory_space<vmem>>, %arg7: memref<1x128xf32, #tpu.memory_space<vmem>>, %arg8: memref<32x10xf32, #tpu.memory_space<vmem>>, %arg9: memref<32x10xf32, #tpu.memory_space<vmem>>, %arg10: memref<1x10xf32, #tpu.memory_space<vmem>>, %arg11: memref<16x10xf32, #tpu.memory_space<vmem>>, %arg12: memref<16x128xf32, #tpu.memory_space<vmem>>, %arg13: memref<16x128xf32, #tpu.memory_space<vmem>>, %arg14: memref<16x32xf32, #tpu.memory_space<vmem>>, %arg15: memref<16x32xf32, #tpu.memory_space<vmem>>) attributes {dimension_semantics = [], scalar_prefetch = 0 : i64, scratch_operands = 4 : i64, tpu.core_type = #tpu.core_type<tc>} {
    %c0 = arith.constant 0 : index
    %c0_0 = arith.constant 0 : index
    %0 = vector.load %arg0[%c0, %c0_0] : memref<16x16xf32, #tpu.memory_space<vmem>>, vector<16x16xf32>
    %c0_1 = arith.constant 0 : index
    %c0_2 = arith.constant 0 : index
    %1 = vector.load %arg2[%c0_1, %c0_2] : memref<16x128xf32, #tpu.memory_space<vmem>>, vector<16x128xf32>
    %cst = arith.constant dense<0.000000e+00> : vector<16x128xf32>
    %2 = tpu.matmul %0, %1, %cst {dimension_numbers = #tpu.dot_dimension_numbers<[1], [0], [0], [1], [0, 0, 1, 1], [], []>} : vector<16x16xf32>, vector<16x128xf32>, vector<16x128xf32> -> vector<16x128xf32>
    %c0_3 = arith.constant 0 : index
    %c0_4 = arith.constant 0 : index
    %3 = vector.load %arg4[%c0_3, %c0_4] : memref<1x128xf32, #tpu.memory_space<vmem>>, vector<1x128xf32>
    %4 = vector.broadcast %3 : vector<1x128xf32> to vector<16x128xf32>
    %5 = arith.addf %2, %4 : vector<16x128xf32>
    %c0_5 = arith.constant 0 : index
    %c0_6 = arith.constant 0 : index
    %6 = vector.load %arg12[%c0_5, %c0_6] : memref<16x128xf32, #tpu.memory_space<vmem>>, vector<16x128xf32>
    tpu.vector_store %arg12[%c0_5, %c0_6], %5 {strides = array<i32>} : memref<16x128xf32, #tpu.memory_space<vmem>>, vector<16x128xf32>,
    %c0_7 = arith.constant 0 : index
    %c0_8 = arith.constant 0 : index
    %7 = vector.load %arg5[%c0_7, %c0_8] : memref<16x128xf32, #tpu.memory_space<vmem>>, vector<16x128xf32>
    %cst_9 = arith.constant dense<0.000000e+00> : vector<16x128xf32>
    %8 = tpu.matmul %0, %7, %cst_9 {dimension_numbers = #tpu.dot_dimension_numbers<[1], [0], [0], [1], [0, 0, 1, 1], [], []>} : vector<16x16xf32>, vector<16x128xf32>, vector<16x128xf32> -> vector<16x128xf32>
    %c0_10 = arith.constant 0 : index
    %c0_11 = arith.constant 0 : index
    %9 = vector.load %arg7[%c0_10, %c0_11] : memref<1x128xf32, #tpu.memory_space<vmem>>, vector<1x128xf32>
    %10 = vector.broadcast %9 : vector<1x128xf32> to vector<16x128xf32>
    %11 = arith.addf %8, %10 : vector<16x128xf32>
    %c0_12 = arith.constant 0 : index
    %c0_13 = arith.constant 0 : index
    %12 = vector.load %arg13[%c0_12, %c0_13] : memref<16x128xf32, #tpu.memory_space<vmem>>, vector<16x128xf32>
    tpu.vector_store %arg13[%c0_12, %c0_13], %11 {strides = array<i32>} : memref<16x128xf32, #tpu.memory_space<vmem>>, vector<16x128xf32>,
    %c0_14 = arith.constant 0 : index
    %c0_15 = arith.constant 0 : index
    %13 = vector.load %arg1[%c0_14, %c0_15] : memref<2x1xi32, #tpu.memory_space<vmem>>, vector<2x1xi32>
    %c0_16 = arith.constant 0 : index
    %c0_17 = arith.constant 0 : index
    %14 = vector.load %arg3[%c0_16, %c0_17] : memref<32x128xf32, #tpu.memory_space<vmem>>, vector<32x128xf32>
    %c0_18 = arith.constant 0 : index
    %c0_19 = arith.constant 0 : index
    %15 = vector.load %arg6[%c0_18, %c0_19] : memref<32x128xf32, #tpu.memory_space<vmem>>, vector<32x128xf32>
    %cst_20 = arith.constant 0.000000e+00 : f32
    %16 = vector.broadcast %cst_20 : f32 to vector<2x32xf32>
    %c0_i32 = arith.constant 0 : i32
    %c8_i32 = arith.constant 8 : i32
    %17 = arith.addi %c0_i32, %c8_i32 : i32
    %c1_i32 = arith.constant 1 : i32
    %18:2 = scf.for %arg16 = %c0_i32 to %17 step %c1_i32 iter_args(%arg17 = %16, %arg18 = %16) -> (vector<2x32xf32>, vector<2x32xf32>)  : i32 {
      %32 = vector.broadcast %arg16 : i32 to vector<2x1xi32>
      %33 = arith.cmpi slt, %32, %13 : vector<2x1xi32>
      %34 = arith.extui %33 : vector<2x1xi1> to vector<2x1xi32>
      %35 = arith.sitofp %34 : vector<2x1xi32> to vector<2x1xf32>
      %c2_i32 = arith.constant 2 : i32
      %36 = arith.muli %arg16, %c2_i32 : i32
      %37 = arith.index_cast %36 : i32 to index
      %c0_40 = arith.constant 0 : index
      %38 = vector.load %arg12[%37, %c0_40] : memref<16x128xf32, #tpu.memory_space<vmem>>, vector<2x128xf32>
      %cst_41 = arith.constant dense<0.000000e+00> : vector<2x128xf32>
      %39 = tpu.matmul %arg17, %14, %cst_41 {dimension_numbers = #tpu.dot_dimension_numbers<[1], [0], [0], [1], [0, 0, 1, 1], [], []>} : vector<2x32xf32>, vector<32x128xf32>, vector<2x128xf32> -> vector<2x128xf32>
      %40 = arith.addf %38, %39 : vector<2x128xf32>
      %41 = vector.extract_strided_slice %40 {offsets = [0, 0], sizes = [2, 32], strides = [1, 1]} : vector<2x128xf32> to vector<2x32xf32>
      %cst_42 = arith.constant 0.000000e+00 : f32
      %42 = vector.broadcast %cst_42 : f32 to vector<2x32xf32>
      %43 = arith.subf %42, %41 : vector<2x32xf32>
      %44 = math.exp %43 : vector<2x32xf32>
      %cst_43 = arith.constant 1.000000e+00 : f32
      %45 = vector.broadcast %cst_43 : f32 to vector<2x32xf32>
      %46 = arith.addf %45, %44 : vector<2x32xf32>
      %cst_44 = arith.constant 1.000000e+00 : f32
      %47 = vector.broadcast %cst_44 : f32 to vector<2x32xf32>
      %48 = arith.divf %47, %46 : vector<2x32xf32>
      %49 = vector.extract_strided_slice %40 {offsets = [0, 32], sizes = [2, 32], strides = [1, 1]} : vector<2x128xf32> to vector<2x32xf32>
      %cst_45 = arith.constant 0.000000e+00 : f32
      %50 = vector.broadcast %cst_45 : f32 to vector<2x32xf32>
      %51 = arith.subf %50, %49 : vector<2x32xf32>
      %52 = math.exp %51 : vector<2x32xf32>
      %cst_46 = arith.constant 1.000000e+00 : f32
      %53 = vector.broadcast %cst_46 : f32 to vector<2x32xf32>
      %54 = arith.addf %53, %52 : vector<2x32xf32>
      %cst_47 = arith.constant 1.000000e+00 : f32
      %55 = vector.broadcast %cst_47 : f32 to vector<2x32xf32>
      %56 = arith.divf %55, %54 : vector<2x32xf32>
      %57 = vector.extract_strided_slice %40 {offsets = [0, 64], sizes = [2, 32], strides = [1, 1]} : vector<2x128xf32> to vector<2x32xf32>
      %58 = math.tanh %57 : vector<2x32xf32>
      %59 = vector.extract_strided_slice %40 {offsets = [0, 96], sizes = [2, 32], strides = [1, 1]} : vector<2x128xf32> to vector<2x32xf32>
      %cst_48 = arith.constant 0.000000e+00 : f32
      %60 = vector.broadcast %cst_48 : f32 to vector<2x32xf32>
      %61 = arith.subf %60, %59 : vector<2x32xf32>
      %62 = math.exp %61 : vector<2x32xf32>
      %cst_49 = arith.constant 1.000000e+00 : f32
      %63 = vector.broadcast %cst_49 : f32 to vector<2x32xf32>
      %64 = arith.addf %63, %62 : vector<2x32xf32>
      %cst_50 = arith.constant 1.000000e+00 : f32
      %65 = vector.broadcast %cst_50 : f32 to vector<2x32xf32>
      %66 = arith.divf %65, %64 : vector<2x32xf32>
      %67 = arith.mulf %56, %arg18 : vector<2x32xf32>
      %68 = arith.mulf %48, %58 : vector<2x32xf32>
      %69 = arith.addf %67, %68 : vector<2x32xf32>
      %70 = math.tanh %69 : vector<2x32xf32>
      %71 = arith.mulf %66, %70 : vector<2x32xf32>
      %72 = vector.broadcast %35 : vector<2x1xf32> to vector<2x32xf32>
      %73 = arith.mulf %72, %71 : vector<2x32xf32>
      %cst_51 = arith.constant 1.000000e+00 : f32
      %74 = vector.broadcast %cst_51 : f32 to vector<2x1xf32>
      %75 = arith.subf %74, %35 : vector<2x1xf32>
      %76 = vector.broadcast %75 : vector<2x1xf32> to vector<2x32xf32>
      %77 = arith.mulf %76, %arg17 : vector<2x32xf32>
      %78 = arith.addf %73, %77 : vector<2x32xf32>
      %79 = vector.broadcast %35 : vector<2x1xf32> to vector<2x32xf32>
      %80 = arith.mulf %79, %69 : vector<2x32xf32>
      %cst_52 = arith.constant 1.000000e+00 : f32
      %81 = vector.broadcast %cst_52 : f32 to vector<2x1xf32>
      %82 = arith.subf %81, %35 : vector<2x1xf32>
      %83 = vector.broadcast %82 : vector<2x1xf32> to vector<2x32xf32>
      %84 = arith.mulf %83, %arg18 : vector<2x32xf32>
      %85 = arith.addf %80, %84 : vector<2x32xf32>
      %86 = vector.broadcast %35 : vector<2x1xf32> to vector<2x32xf32>
      %87 = arith.mulf %86, %78 : vector<2x32xf32>
      %c2_i32_53 = arith.constant 2 : i32
      %88 = arith.muli %arg16, %c2_i32_53 : i32
      %89 = arith.index_cast %88 : i32 to index
      %c0_54 = arith.constant 0 : index
      %90 = vector.load %arg14[%89, %c0_54] : memref<16x32xf32, #tpu.memory_space<vmem>>, vector<2x32xf32>
      tpu.vector_store %arg14[%89, %c0_54], %87 {strides = array<i32>} : memref<16x32xf32, #tpu.memory_space<vmem>>, vector<2x32xf32>,
      scf.yield %78, %85 : vector<2x32xf32>, vector<2x32xf32>
    }
    %c8_i32_21 = arith.constant 8 : i32
    %c0_i32_22 = arith.constant 0 : i32
    %c8_i32_23 = arith.constant 8 : i32
    %19 = arith.addi %c0_i32_22, %c8_i32_23 : i32
    %c1_i32_24 = arith.constant 1 : i32
    %20:2 = scf.for %arg16 = %c0_i32_22 to %19 step %c1_i32_24 iter_args(%arg17 = %16, %arg18 = %16) -> (vector<2x32xf32>, vector<2x32xf32>)  : i32 {
      %c7_i32 = arith.constant 7 : i32
      %32 = arith.subi %c7_i32, %arg16 : i32
      %33 = vector.broadcast %32 : i32 to vector<2x1xi32>
      %34 = arith.cmpi slt, %33, %13 : vector<2x1xi32>
      %35 = arith.extui %34 : vector<2x1xi1> to vector<2x1xi32>
      %36 = arith.sitofp %35 : vector<2x1xi32> to vector<2x1xf32>
      %c2_i32 = arith.constant 2 : i32
      %37 = arith.muli %32, %c2_i32 : i32
      %38 = arith.index_cast %37 : i32 to index
      %c0_40 = arith.constant 0 : index
      %39 = vector.load %arg13[%38, %c0_40] : memref<16x128xf32, #tpu.memory_space<vmem>>, vector<2x128xf32>
      %cst_41 = arith.constant dense<0.000000e+00> : vector<2x128xf32>
      %40 = tpu.matmul %arg17, %15, %cst_41 {dimension_numbers = #tpu.dot_dimension_numbers<[1], [0], [0], [1], [0, 0, 1, 1], [], []>} : vector<2x32xf32>, vector<32x128xf32>, vector<2x128xf32> -> vector<2x128xf32>
      %41 = arith.addf %39, %40 : vector<2x128xf32>
      %42 = vector.extract_strided_slice %41 {offsets = [0, 0], sizes = [2, 32], strides = [1, 1]} : vector<2x128xf32> to vector<2x32xf32>
      %cst_42 = arith.constant 0.000000e+00 : f32
      %43 = vector.broadcast %cst_42 : f32 to vector<2x32xf32>
      %44 = arith.subf %43, %42 : vector<2x32xf32>
      %45 = math.exp %44 : vector<2x32xf32>
      %cst_43 = arith.constant 1.000000e+00 : f32
      %46 = vector.broadcast %cst_43 : f32 to vector<2x32xf32>
      %47 = arith.addf %46, %45 : vector<2x32xf32>
      %cst_44 = arith.constant 1.000000e+00 : f32
      %48 = vector.broadcast %cst_44 : f32 to vector<2x32xf32>
      %49 = arith.divf %48, %47 : vector<2x32xf32>
      %50 = vector.extract_strided_slice %41 {offsets = [0, 32], sizes = [2, 32], strides = [1, 1]} : vector<2x128xf32> to vector<2x32xf32>
      %cst_45 = arith.constant 0.000000e+00 : f32
      %51 = vector.broadcast %cst_45 : f32 to vector<2x32xf32>
      %52 = arith.subf %51, %50 : vector<2x32xf32>
      %53 = math.exp %52 : vector<2x32xf32>
      %cst_46 = arith.constant 1.000000e+00 : f32
      %54 = vector.broadcast %cst_46 : f32 to vector<2x32xf32>
      %55 = arith.addf %54, %53 : vector<2x32xf32>
      %cst_47 = arith.constant 1.000000e+00 : f32
      %56 = vector.broadcast %cst_47 : f32 to vector<2x32xf32>
      %57 = arith.divf %56, %55 : vector<2x32xf32>
      %58 = vector.extract_strided_slice %41 {offsets = [0, 64], sizes = [2, 32], strides = [1, 1]} : vector<2x128xf32> to vector<2x32xf32>
      %59 = math.tanh %58 : vector<2x32xf32>
      %60 = vector.extract_strided_slice %41 {offsets = [0, 96], sizes = [2, 32], strides = [1, 1]} : vector<2x128xf32> to vector<2x32xf32>
      %cst_48 = arith.constant 0.000000e+00 : f32
      %61 = vector.broadcast %cst_48 : f32 to vector<2x32xf32>
      %62 = arith.subf %61, %60 : vector<2x32xf32>
      %63 = math.exp %62 : vector<2x32xf32>
      %cst_49 = arith.constant 1.000000e+00 : f32
      %64 = vector.broadcast %cst_49 : f32 to vector<2x32xf32>
      %65 = arith.addf %64, %63 : vector<2x32xf32>
      %cst_50 = arith.constant 1.000000e+00 : f32
      %66 = vector.broadcast %cst_50 : f32 to vector<2x32xf32>
      %67 = arith.divf %66, %65 : vector<2x32xf32>
      %68 = arith.mulf %57, %arg18 : vector<2x32xf32>
      %69 = arith.mulf %49, %59 : vector<2x32xf32>
      %70 = arith.addf %68, %69 : vector<2x32xf32>
      %71 = math.tanh %70 : vector<2x32xf32>
      %72 = arith.mulf %67, %71 : vector<2x32xf32>
      %73 = vector.broadcast %36 : vector<2x1xf32> to vector<2x32xf32>
      %74 = arith.mulf %73, %72 : vector<2x32xf32>
      %cst_51 = arith.constant 1.000000e+00 : f32
      %75 = vector.broadcast %cst_51 : f32 to vector<2x1xf32>
      %76 = arith.subf %75, %36 : vector<2x1xf32>
      %77 = vector.broadcast %76 : vector<2x1xf32> to vector<2x32xf32>
      %78 = arith.mulf %77, %arg17 : vector<2x32xf32>
      %79 = arith.addf %74, %78 : vector<2x32xf32>
      %80 = vector.broadcast %36 : vector<2x1xf32> to vector<2x32xf32>
      %81 = arith.mulf %80, %70 : vector<2x32xf32>
      %cst_52 = arith.constant 1.000000e+00 : f32
      %82 = vector.broadcast %cst_52 : f32 to vector<2x1xf32>
      %83 = arith.subf %82, %36 : vector<2x1xf32>
      %84 = vector.broadcast %83 : vector<2x1xf32> to vector<2x32xf32>
      %85 = arith.mulf %84, %arg18 : vector<2x32xf32>
      %86 = arith.addf %81, %85 : vector<2x32xf32>
      %87 = vector.broadcast %36 : vector<2x1xf32> to vector<2x32xf32>
      %88 = arith.mulf %87, %79 : vector<2x32xf32>
      %c2_i32_53 = arith.constant 2 : i32
      %89 = arith.muli %32, %c2_i32_53 : i32
      %90 = arith.index_cast %89 : i32 to index
      %c0_54 = arith.constant 0 : index
      %91 = vector.load %arg15[%90, %c0_54] : memref<16x32xf32, #tpu.memory_space<vmem>>, vector<2x32xf32>
      tpu.vector_store %arg15[%90, %c0_54], %88 {strides = array<i32>} : memref<16x32xf32, #tpu.memory_space<vmem>>, vector<2x32xf32>,
      scf.yield %79, %86 : vector<2x32xf32>, vector<2x32xf32>
    }
    %c8_i32_25 = arith.constant 8 : i32
    %c0_26 = arith.constant 0 : index
    %c0_27 = arith.constant 0 : index
    %21 = vector.load %arg14[%c0_26, %c0_27] : memref<16x32xf32, #tpu.memory_space<vmem>>, vector<16x32xf32>
    %c0_28 = arith.constant 0 : index
    %c0_29 = arith.constant 0 : index
    %22 = vector.load %arg8[%c0_28, %c0_29] : memref<32x10xf32, #tpu.memory_space<vmem>>, vector<32x10xf32>
    %cst_30 = arith.constant dense<0.000000e+00> : vector<16x10xf32>
    %23 = tpu.matmul %21, %22, %cst_30 {dimension_numbers = #tpu.dot_dimension_numbers<[1], [0], [0], [1], [0, 0, 1, 1], [], []>} : vector<16x32xf32>, vector<32x10xf32>, vector<16x10xf32> -> vector<16x10xf32>
    %c0_31 = arith.constant 0 : index
    %c0_32 = arith.constant 0 : index
    %24 = vector.load %arg15[%c0_31, %c0_32] : memref<16x32xf32, #tpu.memory_space<vmem>>, vector<16x32xf32>
    %c0_33 = arith.constant 0 : index
    %c0_34 = arith.constant 0 : index
    %25 = vector.load %arg9[%c0_33, %c0_34] : memref<32x10xf32, #tpu.memory_space<vmem>>, vector<32x10xf32>
    %cst_35 = arith.constant dense<0.000000e+00> : vector<16x10xf32>
    %26 = tpu.matmul %24, %25, %cst_35 {dimension_numbers = #tpu.dot_dimension_numbers<[1], [0], [0], [1], [0, 0, 1, 1], [], []>} : vector<16x32xf32>, vector<32x10xf32>, vector<16x10xf32> -> vector<16x10xf32>
    %27 = arith.addf %23, %26 : vector<16x10xf32>
    %c0_36 = arith.constant 0 : index
    %c0_37 = arith.constant 0 : index
    %28 = vector.load %arg10[%c0_36, %c0_37] : memref<1x10xf32, #tpu.memory_space<vmem>>, vector<1x10xf32>
    %29 = vector.broadcast %28 : vector<1x10xf32> to vector<16x10xf32>
    %30 = arith.addf %27, %29 : vector<16x10xf32>
    %c0_38 = arith.constant 0 : index
    %c0_39 = arith.constant 0 : index
    %31 = vector.load %arg11[%c0_38, %c0_39] : memref<16x10xf32, #tpu.memory_space<vmem>>, vector<16x10xf32>
    tpu.vector_store %arg11[%c0_38, %c0_39], %30 {strides = array<i32>} : memref<16x10xf32, #tpu.memory_space<vmem>>, vector<16x10xf32>,
    return
  }
}

</mosaic_0001>

<bundles_post_ra>
// kernel: tpu_custom_call.1
= control target key start
LH: loop header
LB: loop body
LE: loop exit
PB: predicated region body
PF: predicated region fallthrough
CT: control target
= control target key end

     0   :  { %16 = vsyncpa [#allocation7], 0  ;;  %s1404_s0 = inlined_call_operand.vmem [shape: f32[16,16], index: 0, kind: input, shape index: {}]   ;;  %s1405_s1 = inlined_call_operand.vmem [shape: s32[2,1], index: 1, kind: input, shape index: {}]   ;;  %s1406_s2 = inlined_call_operand.hbm [shape: f32[16,128], index: 2, kind: input, shape index: {}]   ;;  %s1407_s3 = inlined_call_operand.vmem [shape: f32[32,128], index: 3, kind: input, shape index: {}]   ;;  %s1408_s4 = inlined_call_operand.vmem [shape: f32[1,128], index: 4, kind: input, shape index: {}]   ;;  %s1409_s5 = inlined_call_operand.hbm [shape: f32[16,128], index: 5, kind: input, shape index: {}]   ;;  %s1410_s6 = inlined_call_operand.vmem [shape: f32[32,128], index: 6, kind: input, shape index: {}]   ;;  %s1411_s7 = inlined_call_operand.vmem [shape: f32[1,128], index: 7, kind: input, shape index: {}]   ;;  %s1412_s8 = inlined_call_operand.vmem [shape: f32[32,10], index: 8, kind: input, shape index: {}]   ;;  %s1413_s9 = inlined_call_operand.vmem [shape: f32[32,10], index: 9, kind: input, shape index: {}]   ;;  %s1414_s10 = inlined_call_operand.vmem [shape: f32[1,10], index: 10, kind: input, shape index: {}]   ;;  %s1415_s11 = inlined_call_operand.hbm [shape: f32[16,10], index: 11, kind: output, shape index: {}]  }
   0x1   :  { %17 = vsyncpa [#allocation10], 0 }
   0x2   :  { %18 = vsyncpa [#allocation8], 0  ;;  %s1123_s17 = smov [#allocation6]   ;;  %s1003_s21 = scalar_lea.hbm %s1406_s2, 256 }
   0x3   :  { %s28_s18 = sshll.u32 %s1123_s17, 4  ;;  %p1004_p0 = scmp.ne.s32.totalorder %s1406_s2, %s1003_s21  ;;  %s29_s18 = int_to_ptr.vmem [resolvable:$true] %s28_s18 }
   0x4   :  { %p1007_p1 = scmp.lt.u32.totalorder %s1003_s21, %s1406_s2 }
   0x6   :  { %p1009_p2 = pnand %p1007_p1, %p1004_p0 }
   0x8   :  { %1012 = shalt.err (!%p1009_p2)
}
   0x9   :  { %s1013_s26 = scalar_lea.vmem %s29_s18, 256  ;;  %p1018_p4 = scmp.lt.s32.totalorder %s29_s18, %s29_s18 }
   0xa   :  { %p1014_p3 = scmp.ne.s32.totalorder %s29_s18, %s1013_s26  ;;  %p1019_p5 = scmp.lt.s32.totalorder %s1013_s26, %s1013_s26 }
   0xc   :  { %p1020_p6 = por %p1019_p5, %p1018_p4 }
   0xe   :  { %p1021_p7 = pnand %p1020_p6, %p1014_p3 }
  0x10   :  { %1024 = shalt.err (!%p1021_p7)
}
  0x11   :  { %s1124_s27 = smov 128   ;;  %s1125_s28 = smov 8  }
  0x12   :  { %34 = dma.hbm_to_vmem [thread:$0]  %s1406_s2, 256, %s29_s18, [#allocation7], %s1124_s27, %s1124_s27, %s1125_s28  }
  0x13   :  { %s1126_s12 = smov [#allocation9]   ;;  %s1025_s16 = scalar_lea.hbm %s1409_s5, 256 }
  0x14   :  { %s44_s13 = sshll.u32 %s1126_s12, 4  ;;  %p1026_p8 = scmp.ne.s32.totalorder %s1409_s5, %s1025_s16  ;;  %s45_s13 = int_to_ptr.vmem [resolvable:$true] %s44_s13 }
  0x15   :  { %p1029_p9 = scmp.lt.u32.totalorder %s1025_s16, %s1409_s5 }
  0x17   :  { %p1031_p10 = pnand %p1029_p9, %p1026_p8 }
  0x19   :  { %1034 = shalt.err (!%p1031_p10)
}
  0x1a   :  { %s1035_s22 = scalar_lea.vmem %s45_s13, 256  ;;  %p1040_p12 = scmp.lt.s32.totalorder %s45_s13, %s45_s13 }
  0x1b   :  { %p1036_p11 = scmp.ne.s32.totalorder %s45_s13, %s1035_s22  ;;  %p1041_p13 = scmp.lt.s32.totalorder %s1035_s22, %s1035_s22 }
  0x1d   :  { %p1042_p0 = por %p1041_p13, %p1040_p12 }
  0x1f   :  { %p1043_p1 = pnand %p1042_p0, %p1036_p11 }
  0x21   :  { %1046 = shalt.err (!%p1043_p1)
}
  0x22   :  { %50 = dma.hbm_to_vmem [thread:$0]  %s1409_s5, 256, %s45_s13, [#allocation10], %s1124_s27, %s1124_s27, %s1125_s28  }
  0x23   :  { %1093 = dma.done.wait [#allocation7], 256  }
  0x24   :  { %1094 = vsyncadd [#allocation7], 4294967040 }
  0x25   :  { %1095 = dma.done.wait [#allocation10], 256  }
  0x26   :  { %1096 = vsyncadd [#allocation10], 4294967040  ;;  %v1233_v0 = vld [vmem:[%s1405_s1] sm:$0x3]  ;;  %v1243_v2 = vld [vmem:[%s1407_s3 + $0x8] sm:$0xff]  ;;  %vm78_vm0 = vcmask 130048  }
  0x27   :  { %v1238_v1 = vld [vmem:[%s1407_s3] sm:$0xff]  ;;  %v1248_v3 = vld [vmem:[%s1407_s3 + $0x10] sm:$0xff]  ;;  %v1253_v4 = vld [vmem:[%s1407_s3 + $0x18] sm:$0xff]  ;;  %v1291_v27 = vmov 0.0   ;;  %v1293_v28 = vmov 0.0  }
  0x28   :  { %v1258_v5 = vld [vmem:[%s1410_s6] sm:$0xff]  ;;  %v1263_v6 = vld [vmem:[%s1410_s6 + $0x8] sm:$0xff]  ;;  %v1268_v7 = vld [vmem:[%s1410_s6 + $0x10] sm:$0xff] }
  0x29   :  { %v1273_v8 = vld [vmem:[%s1410_s6 + $0x18] sm:$0xff]  ;;  %v69_v9 = vld [vmem:[#allocation6] sm:$0xff]  ;;  %v70_v10 = vld [vmem:[#allocation6 + $0x8] sm:$0xff] }
  0x2a   :  { %v162_v11 = vld [vmem:[#allocation9] sm:$0xff]  ;;  %v880_v12 = vpack.c.bf16 %v70_v10, %v69_v9  ;;  %v163_v13 = vld [vmem:[#allocation9 + $0x8] sm:$0xff]  ;;  %v67_v14 = vld [vmem:[%s1404_s0] sm:$0xff] }
  0x2b   :  { %v884_v15 = vpack.c.bf16 %v163_v13, %v162_v11  ;;  %826 = vmatprep.mubr.msk.f32.mxu0 %vm78_vm0, %v67_v14  ;;  %833 = vmatprep.mubr.msk.f32.mxu1 %vm78_vm0, %v67_v14  ;;  %v68_v16 = vld [vmem:[%s1404_s0 + $0x8] sm:$0xff]  ;;  %v775_v17 = vld [vmem:[%s1408_s4] ss:$0 sm:$0xff]  ;;  %s1295_s0 = smov 0  }
  0x2c   :  { %881 = vmatprep.subr.bf16.mxu0 %v880_v12  ;;  %v778_v18 = vld [vmem:[%s1411_s7] ss:$0 sm:$0xff] }
  0x2d   :  { %885 = vmatprep.subr.bf16.mxu1 %v884_v15  ;;  %883 = vmatpush3.bf16.msra.mxu0 %v880_v12 }
  0x2e   :  { %887 = vmatpush3.bf16.msra.mxu1 %v884_v15 }
  0x30   :  { %827 = vmatmul.mubr.msk.f32.vlgmr.msra.gmra.mrb[0].mxu0 %vm78_vm0, %v68_v16 }
  0x31   :  { %834 = vmatmul.mubr.msk.f32.vlgmr.msra.gmra.mrb[0].mxu1 %vm78_vm0, %v68_v16 }
 0x103   :  { %v828_v19 = vpop.f32.mrb[0].mxu0 }
 0x104   :  { %v157_v20 = vadd.f32 %v828_v19, %v775_v17  ;;  %v835_v21 = vpop.f32.mrb[0].mxu1  ;;  %v151_v22 = vpop.f32.mrb[1].mxu0 }
 0x105   :  { %v243_v23 = vadd.f32 %v835_v21, %v778_v18  ;;  %v152_v24 = vadd.f32 %v775_v17, %v151_v22  ;;  %v237_v25 = vpop.f32.mrb[1].mxu1 }
 0x106   :  { %161 = vst [vmem:[#allocation2 + $0x8] sm:$0xff] %v157_v20  ;;  %v238_v26 = vadd.f32 %v778_v18, %v237_v25 }
 0x107   :  { %247 = vst [vmem:[#allocation3 + $0x8] sm:$0xff] %v243_v23  ;;  %160 = vst [vmem:[#allocation2] sm:$0xff] %v152_v24 }
 0x108   :  { %246 = vst [vmem:[#allocation3] sm:$0xff] %v238_v26 }
 0x109 LB: > { %v889_v29 = vpack.c.bf16 %v1243_v2, %v1238_v1  ;;  %v1127_v30 = vmov 0.0|0.0   ;;  %s1128_s4 = smov 32   ;;  %v892_v31 = vpack.c.bf16 %v1253_v4, %v1248_v3  ;;  %vm1129_vm1 = vmmov 0   ;;  %s782_s7 = sshll.u32 %s1109_s0, 1  ;;  %s1109_s0 = sphi %s1295_s0, %s262_s0   ;;  %v1105_v28 = vphi %v1293_v28, %v386_v28   ;;  %v1101_v27 = vphi %v1291_v27, %v389_v27  }
 0x10a   : > { %888 = vmatprep.subr.bf16.mxu0 %v1127_v30  ;;  %273 = vrot.lane.b32.xlu0 %v1105_v28, %s1128_s4  ;;  %v1130_v32 = vmov 0.0   ;;  %vm275_vm2 = vcmask 261120   ;;  %s270_s29 = scalar_lea.vmem [#allocation2], %s782_s7  ;;  %v1131_v38 = vmov 0   ;;  %v265_v39 = vstv %s1109_s0  ;;  %s1132_s30 = smov 64  }
 0x10b   : > { %890 = vmatpush3.bf16.msra.mxu0 %v889_v29  ;;  %844 = vmatprep.mubr.msk.f32.mxu0 %vm1129_vm1, %v1130_v32  ;;  %vm266_vm3 = vcmp.lt.s32.totalorder %v265_v39, %v1233_v0  ;;  %vm396_vm4 = vcmask 254976   ;;  %s395_s5 = scalar_lea.vmem [#allocation4], %s782_s7  ;;  %s262_s0 = sadd.s32 1, %s1109_s0  }
 0x10c   : > { %891 = vmatprep.subr.bf16.mxu0 %v1127_v30  ;;  %984 = vset.pattern.permute.xlu0 %v1131_v38  ;;  %v781_v40 = vsel %vm266_vm3, 1.0, %v1130_v32  ;;  %p259_p2 = scmp.ge.s32.totalorder %s262_s0, 8  }
 0x10d   : > { %983 = vset.pattern.permute.xlu1 %v1131_v38  ;;  %v379_v42 = vsub.f32 1.0, %v781_v40  ;;  %v1325_v9 = vmov (%p259_p2), 0.0   ;;  %v1327_v10 = vmov (%p259_p2), 0.0   ;;  %s1329_s12 = smov (%p259_p2), 0  }
 0x10e   : > { %v271_v34 = vld [vmem:[%s270_s29] sm:$0x3] }
 0x10f   : > { %893 = vmatpush3.bf16.msra.mxu0 %v892_v31 }
 0x17c   : > { %v274_v33 = vpop.permute.xlu0 %273 }
 0x17d   : > { %845 = vmatmul.mubr.msk.f32.vlgmr.msra.gmra.mrb[0].mxu0 %vm275_vm2, %v274_v33 }
 0x250   : > { %v344_v35 = vpop.f32.mrb[0].mxu0 }
 0x251   : > { %v348_v36 = vadd.f32 %v344_v35, %v271_v34  ;;  %v846_v37 = vpop.f32.mrb[1].mxu0 }
 0x253   : > { %985 = vtanh.f32 %v348_v36  ;;  %v349_v43 = vsub.f32 0.0, %v348_v36 }
 0x255   : > { %v350_v44 = vmul.f32 1.442695, %v349_v43 }
 0x257   : > { %987 = vpow2.f32 %v350_v44 }
 0x25d   : > { %v986_v41 = vpop.eup %985 }
 0x25e   : > { %358 = vrot.lane.b32.xlu0 %v986_v41, %s1132_s30 }
 0x261   : > { %v988_v45 = vpop.eup %987 }
 0x262   : > { %382 = vperm.xlu0 %984, %v379_v42   ;;  %v352_v46 = vadd.f32 1.0, %v988_v45 }
 0x264   : > { %989 = vrcp.f32 %v352_v46 }
 0x26e   : > { %v990_v47 = vpop.eup %989 }
 0x26f   : > { %v356_v50 = vmul.f32 %v1101_v27, %v990_v47 }
 0x2d0   : > { %v359_v48 = vpop.permute.xlu0 %358 }
 0x2d1   : > { %v361_v49 = vmul.f32 %v990_v47, %v359_v48 }
 0x2d3   : > { %363 = vrot.lane.b32.xlu1 %v361_v49, %s1128_s4 }
 0x2d7   : > { %375 = vperm.xlu1 %983, %v781_v40  }
 0x2e1   : > { %v383_v54 = vpop.permute.xlu0 %382 }
 0x2e2   : > { %v388_v55 = vmul.f32 %v1101_v27, %v383_v54  ;;  %v385_v59 = vmul.f32 %v1105_v28, %v383_v54 }
 0x345   : > { %v364_v51 = vpop.permute.xlu1 %363 }
 0x346   : > { %v366_v52 = vadd.f32 %v364_v51, %v356_v50 }
 0x348   : > { %991 = vtanh.f32 %v366_v52 }
 0x352   : > { %v992_v53 = vpop.eup %991 }
 0x353   : > { %369 = vrot.lane.b32.xlu1 %v992_v53, %s1132_s30 }
 0x356   : > { %v376_v56 = vpop.permute.xlu1 %375 }
 0x357   : > { %v387_v57 = vmul.f32 %v376_v56, %v366_v52 }
 0x359   : > { %v389_v27 = vadd.f32 %v388_v55, %v387_v57  }
 0x3c5   : > { %v370_v58 = vpop.permute.xlu1 %369 }
 0x3c6   : > { %v372_v60 = vmul.f32 %v990_v47, %v370_v58 }
 0x3c8   : > { %v378_v61 = vmul.f32 %v376_v56, %v372_v60 }
 0x3ca   : > { %v386_v28 = vadd.f32 %v385_v59, %v378_v61  }
 0x3cc   : > { %v390_v62 = vmul.f32 %v386_v28, %v376_v56 }
 0x3ce   : > { %392 = vrot.lane.b32.xlu1 %v390_v62, %s1128_s4 }
 0x43b   :  { %261 = sbr.rel (!%p259_p2) target bundleno = 265 (0x109), region = 90 }
 0x440   : > { %v393_v63 = vpop.permute.xlu1 %392 }
 0x441   : > { %397 = vst.msk [vmem:[%s395_s5] sm:$0x3] %vm396_vm4, %v393_v63 }
 0x442 LB: > { %v895_v11 = vpack.c.bf16 %v1263_v6, %v1258_v5  ;;  %v1133_v12 = vmov 0.0|0.0   ;;  %s1134_s13 = smov 32   ;;  %v898_v1 = vpack.c.bf16 %v1273_v8, %v1268_v7  ;;  %vm1135_vm5 = vmmov 0   ;;  %s406_s14 = ssub.s32 7, %s1121_s12  ;;  %s1121_s12 = sphi %s1329_s12, %s403_s12   ;;  %v1117_v10 = vphi %v1327_v10, %v528_v10   ;;  %v1113_v9 = vphi %v1325_v9, %v531_v9  }
 0x443   : > { %894 = vmatprep.subr.bf16.mxu0 %v1133_v12  ;;  %415 = vrot.lane.b32.xlu0 %v1117_v10, %s1134_s13  ;;  %v1136_v2 = vmov 0.0   ;;  %s1343_s1 = sshll.u32 %s406_s14, 1  ;;  %v1137_v16 = vmov 0   ;;  %v407_v17 = vstv %s406_s14  ;;  %s1138_s16 = smov 64  }
 0x444   : > { %896 = vmatpush3.bf16.msra.mxu0 %v895_v11  ;;  %855 = vmatprep.mubr.msk.f32.mxu0 %vm1135_vm5, %v1136_v2  ;;  %s412_s15 = scalar_lea.vmem [#allocation3], %s1343_s1  ;;  %vm408_vm6 = vcmp.lt.s32.totalorder %v407_v17, %v1233_v0  ;;  %s537_s17 = scalar_lea.vmem [#allocation5], %s1343_s1 }
 0x445   : > { %897 = vmatprep.subr.bf16.mxu0 %v1133_v12  ;;  %v413_v4 = vld [vmem:[%s412_s15] sm:$0x3]  ;;  %994 = vset.pattern.permute.xlu0 %v1137_v16  ;;  %v784_v18 = vsel %vm408_vm6, 1.0, %v1136_v2  ;;  %s403_s12 = sadd.s32 1, %s1121_s12  }
 0x446   : > { %993 = vset.pattern.permute.xlu1 %v1137_v16  ;;  %v521_v20 = vsub.f32 1.0, %v784_v18  ;;  %p400_p3 = scmp.ge.s32.totalorder %s403_s12, 8  }
 0x447   :  { %v548_v42 = vld [vmem:[%s1413_s9] sm:$0xff] (%p400_p3)  ;;  %v549_v43 = vld [vmem:[%s1413_s9 + $0x8] sm:$0xff] (%p400_p3)  ;;  %v550_v0 = vld [vmem:[%s1413_s9 + $0x10] sm:$0xff] (%p400_p3)  ;;  %s1139_s30 = smov (%p400_p3), [#allocation11]   ;;  %vm724_vm7 = vcmask (%p400_p3), 80896  }
 0x448   : > { %899 = vmatpush3.bf16.msra.mxu0 %v898_v1  ;;  %v542_v44 = vld [vmem:[%s1412_s8] sm:$0xff] (%p400_p3)  ;;  %v900_v45 = vpack.c.bf16 (%p400_p3), %v549_v43, %v548_v42  ;;  %v543_v46 = vld [vmem:[%s1412_s8 + $0x8] sm:$0xff] (%p400_p3)  ;;  %v551_v5 = vld [vmem:[%s1413_s9 + $0x18] sm:$0xff] (%p400_p3)  ;;  %s732_s5 = sshll.u32 (%p400_p3), %s1139_s30, 4  ;;  %s733_s5 = int_to_ptr.vmem [resolvable:$true] %s732_s5 }
 0x449   :  { %v908_v6 = vpack.c.bf16 (%p400_p3), %v543_v46, %v542_v44  ;;  %v904_v7 = vpack.c.bf16 (%p400_p3), %v551_v5, %v550_v0  ;;  %v544_v8 = vld [vmem:[%s1412_s8 + $0x10] sm:$0xff] (%p400_p3)  ;;  %v545_v47 = vld [vmem:[%s1412_s8 + $0x18] sm:$0xff] (%p400_p3)  ;;  %v540_v50 = vld [vmem:[#allocation4] sm:$0xff] (%p400_p3)  ;;  %s1047_s12 = scalar_lea.vmem (%p400_p3), %s733_s5, 256  ;;  %p1052_p5 = scmp.lt.s32.totalorder (%p400_p3), %s733_s5, %s733_s5 }
 0x44a   :  { %901 = vmatprep.subr.bf16.mxu1 (%p400_p3), %v900_v45  ;;  %v912_v49 = vpack.c.bf16 (%p400_p3), %v545_v47, %v544_v8  ;;  %v541_v52 = vld [vmem:[#allocation4 + $0x8] sm:$0xff] (%p400_p3)  ;;  %v791_v55 = vld [vmem:[%s1414_s10] ss:$0 sm:$0xff] (%p400_p3)  ;;  %p1048_p4 = scmp.ne.s32.totalorder (%p400_p3), %s733_s5, %s1047_s12  ;;  %p1053_p6 = scmp.lt.s32.totalorder (%p400_p3), %s1047_s12, %s1047_s12 }
 0x44b   :  { %909 = vmatprep.subr.bf16.mxu0 (%p400_p3), %v908_v6  ;;  %903 = vmatpush3.bf16.msra.mxu1 (%p400_p3), %v900_v45 }
 0x44c   :  { %905 = vmatprep.subr.bf16.mxu1 (%p400_p3), %v904_v7  ;;  %p1054_p7 = por (%p400_p3), %p1053_p6, %p1052_p5 }
 0x44e   :  { %p1055_p8 = pnand (%p400_p3), %p1054_p7, %p1048_p4 }
 0x44f   :  { %907 = vmatpush3.bf16.msra.mxu1 (%p400_p3), %v904_v7 }
 0x4b5   : > { %v416_v3 = vpop.permute.xlu0 %415 }
 0x4b6   : > { %856 = vmatmul.mubr.msk.f32.vlgmr.msra.gmra.mrb[0].mxu0 %vm275_vm2, %v416_v3 }
 0x4b7   :  { %911 = vmatpush3.bf16.msra.mxu0 (%p400_p3), %v908_v6  ;;  %877 = vmatprep.mubr.msk.f32.mxu0 (%p400_p3), %vm275_vm2, %v540_v50 }
 0x4b8   :  { %913 = vmatprep.subr.bf16.mxu0 (%p400_p3), %v912_v49 }
 0x4bb   :  { %915 = vmatpush3.bf16.msra.mxu0 (%p400_p3), %v912_v49 }
 0x589   : > { %v486_v13 = vpop.f32.mrb[0].mxu0 }
 0x58a   : > { %v490_v14 = vadd.f32 %v486_v13, %v413_v4  ;;  %v857_v15 = vpop.f32.mrb[1].mxu0  ;;  %878 = vmatmul.mubr.msk.f32.vlgmr.msra.gmra.mrb[0].mxu0 (%p400_p3), %vm275_vm2, %v541_v52 }
 0x58c   : > { %995 = vtanh.f32 %v490_v14  ;;  %v491_v21 = vsub.f32 0.0, %v490_v14 }
 0x58e   : > { %v492_v22 = vmul.f32 1.442695, %v491_v21 }
 0x590   : > { %997 = vpow2.f32 %v492_v22 }
 0x596   : > { %v996_v19 = vpop.eup %995 }
 0x597   : > { %500 = vrot.lane.b32.xlu0 %v996_v19, %s1138_s16 }
 0x59a   : > { %v998_v23 = vpop.eup %997 }
 0x59b   : > { %524 = vperm.xlu0 %994, %v521_v20   ;;  %v494_v24 = vadd.f32 1.0, %v998_v23 }
 0x59d   : > { %999 = vrcp.f32 %v494_v24 }
 0x5a7   : > { %v1000_v25 = vpop.eup %999 }
 0x5a8   : > { %v498_v28 = vmul.f32 %v1113_v9, %v1000_v25 }
 0x609   : > { %v501_v26 = vpop.permute.xlu0 %500 }
 0x60a   : > { %v503_v27 = vmul.f32 %v1000_v25, %v501_v26 }
 0x60c   : > { %505 = vrot.lane.b32.xlu1 %v503_v27, %s1134_s13 }
 0x610   : > { %517 = vperm.xlu1 %993, %v784_v18  }
 0x61a   : > { %v525_v32 = vpop.permute.xlu0 %524 }
 0x61b   : > { %v530_v33 = vmul.f32 %v1113_v9, %v525_v32  ;;  %v527_v37 = vmul.f32 %v1117_v10, %v525_v32 }
 0x65d   :  { %v879_v54 = vpop.f32.mrb[0].mxu0 (%p400_p3) }
 0x65e   :  { %v706_v58 = vpop.f32.mrb[1].mxu0 (%p400_p3) }
 0x67e   : > { %v506_v29 = vpop.permute.xlu1 %505 }
 0x67f   : > { %v508_v30 = vadd.f32 %v506_v29, %v498_v28 }
 0x681   : > { %1001 = vtanh.f32 %v508_v30 }
 0x68b   : > { %v1002_v31 = vpop.eup %1001 }
 0x68c   : > { %511 = vrot.lane.b32.xlu1 %v1002_v31, %s1138_s16 }
 0x68f   : > { %v518_v34 = vpop.permute.xlu1 %517 }
 0x690   : > { %v529_v35 = vmul.f32 %v518_v34, %v508_v30 }
 0x692   : > { %v531_v9 = vadd.f32 %v530_v33, %v529_v35  }
 0x6fe   : > { %v512_v36 = vpop.permute.xlu1 %511 }
 0x6ff   : > { %v514_v38 = vmul.f32 %v1000_v25, %v512_v36 }
 0x701   : > { %v520_v39 = vmul.f32 %v518_v34, %v514_v38 }
 0x703   : > { %v528_v10 = vadd.f32 %v527_v37, %v520_v39  }
 0x705   : > { %v532_v40 = vmul.f32 %v528_v10, %v518_v34 }
 0x707   : > { %534 = vrot.lane.b32.xlu1 %v532_v40, %s1134_s13 }
 0x774   :  { %402 = sbr.rel (!%p400_p3) target bundleno = 1090 (0x442), region = 101 }
 0x779   : > { %v535_v41 = vpop.permute.xlu1 %534 }
 0x77a   : > { %539 = vst.msk [vmem:[%s537_s17] sm:$0x3] %vm396_vm4, %v535_v41 }
 0x781   :  { %v546_v48 = vld [vmem:[#allocation5] sm:$0xff]  ;;  %v547_v51 = vld [vmem:[#allocation5 + $0x8] sm:$0xff] }
 0x782   :  { %866 = vmatprep.mubr.msk.f32.mxu1 %vm275_vm2, %v546_v48 }
 0x783   :  { %867 = vmatmul.mubr.msk.f32.vlgmr.msra.gmra.mrb[0].mxu1 %vm275_vm2, %v547_v51 }
 0x856   :  { %v868_v53 = vpop.f32.mrb[0].mxu1 }
 0x857   :  { %v625_v56 = vpop.f32.mrb[1].mxu1  ;;  %v712_v57 = vadd.f32 %v879_v54, %v868_v53 }
 0x858   :  { %v707_v59 = vadd.f32 %v706_v58, %v625_v56 }
 0x859   :  { %v723_v60 = vadd.f32 %v791_v55, %v712_v57 }
 0x85a   :  { %v722_v61 = vadd.f32 %v791_v55, %v707_v59 }
 0x85b   :  { %726 = vst.msk [vmem:[#allocation11 + $0x8] sm:$0xff] %vm724_vm7, %v723_v60 }
 0x85c   :  { %725 = vst.msk [vmem:[#allocation11] sm:$0xff] %vm724_vm7, %v722_v61 }
 0x85d   :  { %1058 = shalt.err (!%p1055_p8)
}
 0x85e   :  { %s1059_s14 = scalar_lea.hbm %s1415_s11, 256 }
 0x85f   :  { %p1060_p9 = scmp.ne.s32.totalorder %s1415_s11, %s1059_s14  ;;  %p1063_p10 = scmp.lt.u32.totalorder %s1059_s14, %s1415_s11 }
 0x861   :  { %p1065_p11 = pnand %p1063_p10, %p1060_p9 }
 0x863   :  { %1068 = shalt.err (!%p1065_p11)
}
 0x864   :  { %738 = dma.vmem_to_hbm [thread:$0]  %s733_s5, 256, %s1415_s11, [#allocation8], %s1124_s27, %s1124_s27, %s1125_s28  }
 0x865   :  { %1097 = dma.done.wait [#allocation8], 256  }
 0x866   :  { %1098 = vsyncadd [#allocation8], 4294967040 }
 0x867   :  { %742 = vsyncpa [#allocation7], 1 }
 0x868   :  { %743 = vsyncpa [#allocation10], 1 }
 0x869   :  { %744 = vsyncpa [#allocation8], 1 }

</bundles_post_ra>
